<compile_context>
chip_gen: v6e
topology: v6e:2x2x1
jax: 0.10.0
libtpu: 0.0.40
codegen_flags: <defaults>
</compile_context>

<pallas_src>
import math
import functools

import jax
import jax.numpy as jnp
from jax import lax
from jax.experimental import pallas as pl
from jax.experimental.pallas import tpu as pltpu


_INV_SQRT2 = 1.0 / math.sqrt(2.0)


def _gelu_exact(x):
    # exact gelu, matches torch: x * 0.5 * (1 + erf(x / sqrt(2)))
    return x * 0.5 * (1.0 + lax.erf(x * _INV_SQRT2))


def lm_head_kernel(x_ref, w1_ref, b1_ref, g_ref, beta_ref, w2_ref, bias_ref,
                   out_ref, h_ref, *, eps):
    j = pl.program_id(1)

    # Compute dense + gelu + layer_norm once per row tile; reuse across the
    # whole vocab sweep from the bf16 VMEM scratch.
    @pl.when(j == 0)
    def _():
        h = jnp.dot(x_ref[...], w1_ref[...],
                    preferred_element_type=jnp.float32)   # bf16 x bf16 -> f32
        h = h + b1_ref[...]
        h = _gelu_exact(h)                                 # f32 elementwise
        mean = jnp.mean(h, axis=-1, keepdims=True)
        var = jnp.mean(jnp.square(h - mean), axis=-1, keepdims=True)
        h = (h - mean) * lax.rsqrt(var + eps)
        h = h * g_ref[...] + beta_ref[...]
        h_ref[...] = h.astype(h_ref.dtype)                 # store bf16

    # Decoder matmul (bf16 operands, f32 accumulate) + learned bias.
    out_ref[...] = (
        jnp.dot(h_ref[...], w2_ref[...], preferred_element_type=jnp.float32)
        + bias_ref[...]
    ).astype(out_ref.dtype)


def _pick_tile(dim, tile, align):
    # Full-extent block for small dims (always legal: "equals full dim");
    # otherwise an aligned tile, with cdiv grid + masked edge blocks.
    if dim <= tile:
        return dim
    return max(align, (tile // align) * align)


def roberta_lm_head(features, params, *, eps=1e-5, tm=256, tn=1024):
    """features: [batch, seq, H] (or [N, H]). Returns f32 logits [..., V]."""
    w1, b1, gamma, beta, w2, bias = (
        params["dense_w"], params["dense_b"], params["ln_g"], params["ln_b"],
        params["dec_w"], params["dec_b"],
    )
    H = w1.shape[0]
    V = w2.shape[1]

    orig_shape = features.shape
    x = features.reshape(-1, H)
    N = x.shape[0]

    tm = _pick_tile(N, tm, 8)      # row tile: multiple of 8 (or full extent)
    tn = _pick_tile(V, tn, 128)    # vocab tile: multiple of 128 (or full extent)
    grid = (pl.cdiv(N, tm), pl.cdiv(V, tn))

    # bf16 matmul operands (MXU-native, halves HBM traffic on the w2 stream);
    # bias / LN params stay f32.
    x_b = x.astype(jnp.bfloat16)
    w1_b = w1.astype(jnp.bfloat16)
    w2_b = w2.astype(jnp.bfloat16)
    b1_p = b1.reshape(1, H).astype(jnp.float32)
    g_p = gamma.reshape(1, H).astype(jnp.float32)
    beta_p = beta.reshape(1, H).astype(jnp.float32)
    bias_p = bias.reshape(1, V).astype(jnp.float32)

    # VMEM budget (bytes): double-buffered inputs/outputs + resident scratch.
    est = (2 * (tm * H * 2)            # x tile (bf16) x2
           + 2 * (H * H * 2)           # w1 (bf16) x2
           + 2 * 3 * (H * 4)           # b1/gamma/beta (f32) x2
           + 2 * (H * tn * 2)          # w2 tile (bf16) x2
           + 2 * (tn * 4)              # bias tile (f32) x2
           + 2 * (tm * tn * 4)         # out tile (f32) x2
           + tm * H * 2)               # h scratch (bf16)
    vmem_limit = min(max(2 * est + (2 << 20), 16 << 20), 64 << 20)

    out = pl.pallas_call(
        functools.partial(lm_head_kernel, eps=eps),
        out_shape=jax.ShapeDtypeStruct((N, V), jnp.float32),
        grid_spec=pltpu.PrefetchScalarGridSpec(
            num_scalar_prefetch=0,
            grid=grid,
            in_specs=[
                pl.BlockSpec((tm, H), lambda i, j: (i, 0)),   # feature rows
                pl.BlockSpec((H, H), lambda i, j: (0, 0)),    # dense weight
                pl.BlockSpec((1, H), lambda i, j: (0, 0)),    # dense bias
                pl.BlockSpec((1, H), lambda i, j: (0, 0)),    # LN gamma
                pl.BlockSpec((1, H), lambda i, j: (0, 0)),    # LN beta
                pl.BlockSpec((H, tn), lambda i, j: (0, j)),   # decoder weight
                pl.BlockSpec((1, tn), lambda i, j: (0, j)),   # decoder bias
            ],
            out_specs=pl.BlockSpec((tm, tn), lambda i, j: (i, j)),
            scratch_shapes=[pltpu.VMEM((tm, H), jnp.bfloat16)],
        ),
        compiler_params=pltpu.CompilerParams(
            # Row axis parallel (megacore); vocab axis must stay arbitrary so
            # the @pl.when(j==0) scratch initialization/reuse is valid.
            dimension_semantics=("parallel", "arbitrary"),
            vmem_limit_bytes=vmem_limit,
        ),
    )(x_b, w1_b, b1_p, g_p, beta_p, w2_b, bias_p)

    return out.reshape(orig_shape[:-1] + (V,))


def init_params(key, hidden_size, vocab_size):
    k1, k2 = jax.random.split(key, 2)
    scale = 0.02
    return {
        "dense_w": scale * jax.random.normal(k1, (hidden_size, hidden_size), jnp.float32),
        "dense_b": jnp.zeros((hidden_size,), jnp.float32),
        "ln_g": jnp.ones((hidden_size,), jnp.float32),
        "ln_b": jnp.zeros((hidden_size,), jnp.float32),
        "dec_w": scale * jax.random.normal(k2, (hidden_size, vocab_size), jnp.float32),
        "dec_b": jnp.zeros((vocab_size,), jnp.float32),
    }


def _reference(features, params, eps=1e-5):
    x = features.astype(jnp.float32)
    x = x @ params["dense_w"] + params["dense_b"]
    x = x * 0.5 * (1.0 + lax.erf(x / math.sqrt(2.0)))
    mean = jnp.mean(x, axis=-1, keepdims=True)
    var = jnp.mean(jnp.square(x - mean), axis=-1, keepdims=True)
    x = (x - mean) / jnp.sqrt(var + eps)
    x = x * params["ln_g"] + params["ln_b"]
    return x @ params["dec_w"] + params["dec_b"]


if __name__ == "__main__":
    key = jax.random.PRNGKey(0)

    # Test 1: tiny shapes, single full-extent block (grid (1,1)).
    batch, seq, hidden, vocab = 2, 7, 32, 300
    k_feat, k_param, key = jax.random.split(key, 3)
    features = jax.random.normal(k_feat, (batch, seq, hidden), jnp.float32)
    params = init_params(k_param, hidden, vocab)

    logits = roberta_lm_head(features, params, eps=1e-5)
    logits = jax.block_until_ready(logits)
    ref = _reference(features, params, eps=1e-5)
    assert logits.shape == (batch, seq, vocab)
    # bf16 matmul operands with f32 accumulation -> loosened tolerance vs f32 ref.
    assert jnp.allclose(logits, ref, atol=1e-2, rtol=1e-2), "mismatch vs reference (test 1)"

    # Test 2: multi-tile grid with partial edge blocks on BOTH axes
    # (rows: 18 with tm=16 -> last block 2 valid rows; vocab: 700 with tn=512
    #  -> last block 188 valid columns). Exercises the masked-OOB path that
    # replaces the old host-side padding / slicing.
    batch2, seq2, hidden2, vocab2 = 2, 9, 128, 700
    k_feat2, k_param2, key = jax.random.split(key, 3)
    features2 = jax.random.normal(k_feat2, (batch2, seq2, hidden2), jnp.float32)
    params2 = init_params(k_param2, hidden2, vocab2)

    logits2 = roberta_lm_head(features2, params2, eps=1e-5, tm=16, tn=512)
    logits2 = jax.block_until_ready(logits2)
    ref2 = _reference(features2, params2, eps=1e-5)
    assert logits2.shape == (batch2, seq2, vocab2)
    assert jnp.allclose(logits2, ref2, atol=2e-2, rtol=2e-2), "mismatch vs reference (test 2)"

    print("KERNEL_OK")
</pallas_src>

<mosaic_0001>
module attributes {stable_mosaic.version = 11 : i64} {
  func.func @lm_head_kernel(%arg0: i32, %arg1: i32, %arg2: memref<14x32xbf16, #tpu.memory_space<vmem>>, %arg3: memref<32x32xbf16, #tpu.memory_space<vmem>>, %arg4: memref<1x32xf32, #tpu.memory_space<vmem>>, %arg5: memref<1x32xf32, #tpu.memory_space<vmem>>, %arg6: memref<1x32xf32, #tpu.memory_space<vmem>>, %arg7: memref<32x300xbf16, #tpu.memory_space<vmem>>, %arg8: memref<1x300xf32, #tpu.memory_space<vmem>>, %arg9: memref<14x300xf32, #tpu.memory_space<vmem>>, %arg10: memref<14x32xbf16, #tpu.memory_space<vmem>>) attributes {dimension_semantics = [#tpu.dimension_semantics<parallel>, #tpu.dimension_semantics<arbitrary>], iteration_bounds = array<i64: 1, 1>, scalar_prefetch = 0 : i64, scratch_operands = 1 : i64, tpu.core_type = #tpu.core_type<tc>, window_params = [{transform_indices = @transform_0, window_bounds = array<i64: 14, 32>}, {pipeline_mode = #tpu.pipeline_mode<synchronous>, transform_indices = @transform_1, window_bounds = array<i64: 32, 32>}, {pipeline_mode = #tpu.pipeline_mode<synchronous>, transform_indices = @transform_2, window_bounds = array<i64: 1, 32>}, {pipeline_mode = #tpu.pipeline_mode<synchronous>, transform_indices = @transform_3, window_bounds = array<i64: 1, 32>}, {pipeline_mode = #tpu.pipeline_mode<synchronous>, transform_indices = @transform_4, window_bounds = array<i64: 1, 32>}, {transform_indices = @transform_5, window_bounds = array<i64: 32, 300>}, {transform_indices = @transform_6, window_bounds = array<i64: 1, 300>}, {transform_indices = @transform_7, window_bounds = array<i64: 14, 300>}]} {
    %c0_i32 = arith.constant 0 : i32
    %0 = arith.cmpi eq, %arg1, %c0_i32 : i32
    %1 = arith.extui %0 : i1 to i32
    %c0_i32_0 = arith.constant 0 : i32
    %2 = arith.cmpi ne, %1, %c0_i32_0 : i32
    scf.if %2 {
      %c0_8 = arith.constant 0 : index
      %c0_9 = arith.constant 0 : index
      %10 = vector.load %arg2[%c0_8, %c0_9] : memref<14x32xbf16, #tpu.memory_space<vmem>>, vector<14x32xbf16>
      %c0_10 = arith.constant 0 : index
      %c0_11 = arith.constant 0 : index
      %11 = vector.load %arg3[%c0_10, %c0_11] : memref<32x32xbf16, #tpu.memory_space<vmem>>, vector<32x32xbf16>
      %cst_12 = arith.constant dense<0.000000e+00> : vector<14x32xf32>
      %12 = tpu.matmul %10, %11, %cst_12 {dimension_numbers = #tpu.dot_dimension_numbers<[1], [0], [0], [1], [0, 0, 1, 1], [], []>} : vector<14x32xbf16>, vector<32x32xbf16>, vector<14x32xf32> -> vector<14x32xf32>
      %c0_13 = arith.constant 0 : index
      %c0_14 = arith.constant 0 : index
      %13 = vector.load %arg4[%c0_13, %c0_14] : memref<1x32xf32, #tpu.memory_space<vmem>>, vector<1x32xf32>
      %14 = vector.broadcast %13 : vector<1x32xf32> to vector<14x32xf32>
      %15 = arith.addf %12, %14 : vector<14x32xf32>
      %cst_15 = arith.constant 5.000000e-01 : f32
      %16 = vector.broadcast %cst_15 : f32 to vector<14x32xf32>
      %17 = arith.mulf %15, %16 : vector<14x32xf32>
      %cst_16 = arith.constant 0.707106769 : f32
      %18 = vector.broadcast %cst_16 : f32 to vector<14x32xf32>
      %19 = arith.mulf %15, %18 : vector<14x32xf32>
      %20 = math.erf %19 : vector<14x32xf32>
      %cst_17 = arith.constant 1.000000e+00 : f32
      %21 = vector.broadcast %cst_17 : f32 to vector<14x32xf32>
      %22 = arith.addf %21, %20 : vector<14x32xf32>
      %23 = arith.mulf %17, %22 : vector<14x32xf32>
      %cst_18 = arith.constant dense<0.000000e+00> : vector<14xf32>
      %24 = vector.multi_reduction <add>, %23, %cst_18 [1] : vector<14x32xf32> to vector<14xf32>
      %25 = vector.shape_cast %24 : vector<14xf32> to vector<14x1xf32>
      %cst_19 = arith.constant 3.200000e+01 : f32
      %26 = vector.broadcast %cst_19 : f32 to vector<14x1xf32>
      %27 = arith.divf %25, %26 : vector<14x1xf32>
      %28 = vector.broadcast %27 : vector<14x1xf32> to vector<14x32xf32>
      %29 = arith.subf %23, %28 : vector<14x32xf32>
      %30 = arith.mulf %29, %29 : vector<14x32xf32>
      %cst_20 = arith.constant dense<0.000000e+00> : vector<14xf32>
      %31 = vector.multi_reduction <add>, %30, %cst_20 [1] : vector<14x32xf32> to vector<14xf32>
      %32 = vector.shape_cast %31 : vector<14xf32> to vector<14x1xf32>
      %cst_21 = arith.constant 3.200000e+01 : f32
      %33 = vector.broadcast %cst_21 : f32 to vector<14x1xf32>
      %34 = arith.divf %32, %33 : vector<14x1xf32>
      %35 = vector.broadcast %27 : vector<14x1xf32> to vector<14x32xf32>
      %36 = arith.subf %23, %35 : vector<14x32xf32>
      %cst_22 = arith.constant 9.99999974E-6 : f32
      %37 = vector.broadcast %cst_22 : f32 to vector<14x1xf32>
      %38 = arith.addf %34, %37 : vector<14x1xf32>
      %39 = math.rsqrt %38 : vector<14x1xf32>
      %40 = vector.broadcast %39 : vector<14x1xf32> to vector<14x32xf32>
      %41 = arith.mulf %36, %40 : vector<14x32xf32>
      %c0_23 = arith.constant 0 : index
      %c0_24 = arith.constant 0 : index
      %42 = vector.load %arg5[%c0_23, %c0_24] : memref<1x32xf32, #tpu.memory_space<vmem>>, vector<1x32xf32>
      %43 = vector.broadcast %42 : vector<1x32xf32> to vector<14x32xf32>
      %44 = arith.mulf %41, %43 : vector<14x32xf32>
      %c0_25 = arith.constant 0 : index
      %c0_26 = arith.constant 0 : index
      %45 = vector.load %arg6[%c0_25, %c0_26] : memref<1x32xf32, #tpu.memory_space<vmem>>, vector<1x32xf32>
      %46 = vector.broadcast %45 : vector<1x32xf32> to vector<14x32xf32>
      %47 = arith.addf %44, %46 : vector<14x32xf32>
      %48 = arith.truncf %47 : vector<14x32xf32> to vector<14x32xbf16>
      %c0_27 = arith.constant 0 : index
      %c0_28 = arith.constant 0 : index
      %49 = vector.load %arg10[%c0_27, %c0_28] : memref<14x32xbf16, #tpu.memory_space<vmem>>, vector<14x32xbf16>
      tpu.vector_store %arg10[%c0_27, %c0_28], %48 {strides = array<i32>} : memref<14x32xbf16, #tpu.memory_space<vmem>>, vector<14x32xbf16>,
    } else {
    }
    %c0 = arith.constant 0 : index
    %c0_1 = arith.constant 0 : index
    %3 = vector.load %arg10[%c0, %c0_1] : memref<14x32xbf16, #tpu.memory_space<vmem>>, vector<14x32xbf16>
    %c0_2 = arith.constant 0 : index
    %c0_3 = arith.constant 0 : index
    %4 = vector.load %arg7[%c0_2, %c0_3] : memref<32x300xbf16, #tpu.memory_space<vmem>>, vector<32x300xbf16>
    %cst = arith.constant dense<0.000000e+00> : vector<14x300xf32>
    %5 = tpu.matmul %3, %4, %cst {dimension_numbers = #tpu.dot_dimension_numbers<[1], [0], [0], [1], [0, 0, 1, 1], [], []>} : vector<14x32xbf16>, vector<32x300xbf16>, vector<14x300xf32> -> vector<14x300xf32>
    %c0_4 = arith.constant 0 : index
    %c0_5 = arith.constant 0 : index
    %6 = vector.load %arg8[%c0_4, %c0_5] : memref<1x300xf32, #tpu.memory_space<vmem>>, vector<1x300xf32>
    %7 = vector.broadcast %6 : vector<1x300xf32> to vector<14x300xf32>
    %8 = arith.addf %5, %7 : vector<14x300xf32>
    %c0_6 = arith.constant 0 : index
    %c0_7 = arith.constant 0 : index
    %9 = vector.load %arg9[%c0_6, %c0_7] : memref<14x300xf32, #tpu.memory_space<vmem>>, vector<14x300xf32>
    tpu.vector_store %arg9[%c0_6, %c0_7], %8 {strides = array<i32>} : memref<14x300xf32, #tpu.memory_space<vmem>>, vector<14x300xf32>,
    return
  }
  func.func @transform_0(%arg0: i32, %arg1: i32) -> (i32, i32) {
    %c0_i32 = arith.constant 0 : i32
    %c0_i32_0 = arith.constant 0 : i32
    return %arg0, %c0_i32 : i32, i32
  }
  func.func @transform_1(%arg0: i32, %arg1: i32) -> (i32, i32) {
    %c0_i32 = arith.constant 0 : i32
    %c0_i32_0 = arith.constant 0 : i32
    %c0_i32_1 = arith.constant 0 : i32
    return %c0_i32, %c0_i32_0 : i32, i32
  }
  func.func @transform_2(%arg0: i32, %arg1: i32) -> (i32, i32) {
    %c0_i32 = arith.constant 0 : i32
    %c0_i32_0 = arith.constant 0 : i32
    %c0_i32_1 = arith.constant 0 : i32
    return %c0_i32, %c0_i32_0 : i32, i32
  }
  func.func @transform_3(%arg0: i32, %arg1: i32) -> (i32, i32) {
    %c0_i32 = arith.constant 0 : i32
    %c0_i32_0 = arith.constant 0 : i32
    %c0_i32_1 = arith.constant 0 : i32
    return %c0_i32, %c0_i32_0 : i32, i32
  }
  func.func @transform_4(%arg0: i32, %arg1: i32) -> (i32, i32) {
    %c0_i32 = arith.constant 0 : i32
    %c0_i32_0 = arith.constant 0 : i32
    %c0_i32_1 = arith.constant 0 : i32
    return %c0_i32, %c0_i32_0 : i32, i32
  }
  func.func @transform_5(%arg0: i32, %arg1: i32) -> (i32, i32) {
    %c0_i32 = arith.constant 0 : i32
    %c0_i32_0 = arith.constant 0 : i32
    return %c0_i32, %arg1 : i32, i32
  }
  func.func @transform_6(%arg0: i32, %arg1: i32) -> (i32, i32) {
    %c0_i32 = arith.constant 0 : i32
    %c0_i32_0 = arith.constant 0 : i32
    return %c0_i32, %arg1 : i32, i32
  }
  func.func @transform_7(%arg0: i32, %arg1: i32) -> (i32, i32) {
    %c0_i32 = arith.constant 0 : i32
    return %arg0, %arg1 : i32, i32
  }
}

</mosaic_0001>

<bundles_post_ra>
// kernel: tpu_custom_call.1
= control target key start
LH: loop header
LB: loop body
LE: loop exit
PB: predicated region body
PF: predicated region fallthrough
CT: control target
= control target key end

     0   :  { %12 = vsyncpa [#allocation4], 0  ;;  %s637_s0 = inlined_call_operand.hbm [shape: bf16[14,32], index: 0, kind: input, shape index: {}]   ;;  %s638_s1 = inlined_call_operand.hbm [shape: bf16[32,32], index: 1, kind: input, shape index: {}]   ;;  %s639_s2 = inlined_call_operand.vmem [shape: f32[1,32], index: 2, kind: input, shape index: {}]   ;;  %s640_s3 = inlined_call_operand.vmem [shape: f32[1,32], index: 3, kind: input, shape index: {}]   ;;  %s641_s4 = inlined_call_operand.vmem [shape: f32[1,32], index: 4, kind: input, shape index: {}]   ;;  %s642_s5 = inlined_call_operand.hbm [shape: bf16[32,300], index: 5, kind: input, shape index: {}]   ;;  %s643_s6 = inlined_call_operand.vmem [shape: f32[1,300], index: 6, kind: input, shape index: {}]   ;;  %s644_s7 = inlined_call_operand.hbm [shape: f32[14,300], index: 7, kind: output, shape index: {}]  }
   0x1   :  { %13 = vsyncpa [#allocation7], 0 }
   0x2   :  { %14 = vsyncpa [#allocation5], 0  ;;  %s555_s24 = smov [#allocation6]   ;;  %s556_s26 = smov [#allocation3]  }
   0x3   :  { %s32_s25 = sshll.u32 %s555_s24, 4  ;;  %s20_s27 = sshll.u32 %s556_s26, 4  ;;  %s33_s25 = int_to_ptr.vmem [resolvable:$true] %s32_s25  ;;  %s21_s27 = int_to_ptr.vmem [resolvable:$true] %s20_s27 }
   0x4   :  { %s477_s28 = scalar_lea.vmem %s33_s25, 256  ;;  %p482_p1 = scmp.lt.s32.totalorder %s33_s25, %s33_s25 }
   0x5   :  { %p478_p0 = scmp.ne.s32.totalorder %s33_s25, %s477_s28  ;;  %p483_p2 = scmp.lt.s32.totalorder %s477_s28, %s477_s28 }
   0x7   :  { %p484_p3 = por %p483_p2, %p482_p1 }
   0x9   :  { %p485_p4 = pnand %p484_p3, %p478_p0 }
   0xb   :  { %488 = shalt.err (!%p485_p4)
}
   0xc   :  { %s557_s29 = smov 64   ;;  %s558_s30 = smov 4  }
   0xd   :  { %38 = dma.hbm_to_vmem [thread:$0]  %s638_s1, 256, %s33_s25, [#allocation7], %s557_s29, %s557_s29, %s558_s30  }
   0xe   :  { %s497_s10 = scalar_lea.vmem %s21_s27, 128  ;;  %p502_p6 = scmp.lt.s32.totalorder %s21_s27, %s21_s27 }
   0xf   :  { %p498_p5 = scmp.ne.s32.totalorder %s21_s27, %s497_s10  ;;  %p503_p7 = scmp.lt.s32.totalorder %s497_s10, %s497_s10 }
  0x11   :  { %p504_p8 = por %p503_p7, %p502_p6 }
  0x13   :  { %p505_p9 = pnand %p504_p8, %p498_p5 }
  0x15   :  { %508 = shalt.err (!%p505_p9)
}
  0x16   :  { %26 = dma.hbm_to_vmem [thread:$0]  %s637_s0, 128, %s21_s27, [#allocation4], %s557_s29, %s557_s29, %s558_s30  }
  0x17   :  { %s559_s13 = smov [#allocation8]  }
  0x18   :  { %s50_s14 = sshll.u32 %s559_s13, 4  ;;  %s51_s14 = int_to_ptr.vmem [resolvable:$true] %s50_s14 }
  0x19   :  { %s517_s15 = scalar_lea.vmem %s51_s14, 768  ;;  %p522_p11 = scmp.lt.s32.totalorder %s51_s14, %s51_s14 }
  0x1a   :  { %p518_p10 = scmp.ne.s32.totalorder %s51_s14, %s517_s15  ;;  %p523_p12 = scmp.lt.s32.totalorder %s517_s15, %s517_s15 }
  0x1c   :  { %p524_p13 = por %p523_p12, %p522_p11 }
  0x1e   :  { %p525_p0 = pnand %p524_p13, %p518_p10 }
  0x20   :  { %528 = shalt.err (!%p525_p0)
}
  0x21   :  { %s560_s1 = smov 192   ;;  %s561_s16 = smov 12  }
  0x22   :  { %56 = dma.hbm_to_vmem [thread:$0]  %s642_s5, 768, %s51_s14, [#allocation7], %s560_s1, %s560_s1, %s561_s16  }
  0x23   :  { %549 = dma.done.wait [#allocation4], 128  }
  0x24   :  { %550 = vsyncadd [#allocation4], 4294967168 }
  0x25   :  { %551 = dma.done.wait [#allocation7], 1024  }
  0x26   :  { %552 = vsyncadd [#allocation7], 4294966272  ;;  %v562_v0 = vmov 0.0   ;;  %vm563_vm0 = vmmov 0   ;;  %v449_v1 = vld [vmem:[#allocation6 + $0x8] sm:$0xff]   ;;  %v450_v2 = vld [vmem:[#allocation6] sm:$0xff]   ;;  %v228_v59 = vlaneseq }
  0x27   :  { %420 = vmatprep.subr.bf16.mxu0 %v562_v0  ;;  %424 = vmatprep.mubr.msk.bf16.mxu0 %vm563_vm0, %v562_v0  ;;  %v451_v3 = vld [vmem:[#allocation3] sm:$0x7f]   ;;  %vm103_vm1 = vcmask 261120   ;;  %v394_v4 = vld [vmem:[%s639_s2] ss:$0 sm:$0xff]  ;;  %vm161_vm2 = vcmask 259072  }
  0x28   :  { %421 = vmatpush3.bf16.msra.mxu0 %v449_v1  ;;  %v452_v33 = vld [vmem:[#allocation8 + $0x1c] ss:$12 sps:$4 sm:$0xff]   ;;  %v454_v34 = vld [vmem:[#allocation8 + $0x18] ss:$12 sps:$4 sm:$0xff]   ;;  %v455_v35 = vld [vmem:[#allocation8 + $0x20] ss:$12 sps:$4 sm:$0xff]  }
  0x29   :  { %422 = vmatprep.subr.bf16.mxu0 %v562_v0  ;;  %v456_v36 = vld [vmem:[#allocation8 + $0x4] ss:$12 sps:$4 sm:$0xff]   ;;  %296 = vmatprep.subr.bf16.mxu1 %v452_v33  ;;  %v458_v37 = vld [vmem:[#allocation8] ss:$12 sps:$4 sm:$0xff]   ;;  %v459_v38 = vld [vmem:[#allocation8 + $0x8] ss:$12 sps:$4 sm:$0xff]  }
  0x2a   :  { %297 = vmatpush1.bf16.msra.mxu1 %v454_v34  ;;  %v564_v39 = vmov 0   ;;  %v399_v47 = vld [vmem:[%s640_s3] ss:$0 sm:$0xff]  ;;  %vm212_vm3 = vcmask 257024   ;;  %vm214_vm4 = vcmask 256000   ;;  %v229_v60 = vshrl.u32 %v228_v59, 7 }
  0x2b   :  { %298 = vmatprep.subr.bf16.mxu1 %v456_v36  ;;  %316 = vmatprep.mubr.bf16.mxu1 %v564_v39  ;;  %v400_v49 = vld [vmem:[%s641_s4] ss:$0 sm:$0xff]  ;;  %vm370_vm5 = vcmask 359424   ;;  %s565_s22 = smov [#allocation9]   ;;  %vm374_vm6 = vcmask 357376  }
  0x2c   :  { %423 = vmatpush3.bf16.msra.mxu0 %v450_v2  ;;  %v230_v61 = vsub.s32 0, %v229_v60  ;;  %v238_v62 = vsub.s32 2, %v229_v60  ;;  %v226_v63 = vld [vmem:[%s643_s6] sm:$0x7]  ;;  %s381_s23 = sshll.u32 %s565_s22, 4  ;;  %s382_s23 = int_to_ptr.vmem [resolvable:$true] %s381_s23 }
  0x2d   :  { %428 = vmatprep.subr.bf16.mxu0 %v562_v0  ;;  %s529_s6 = scalar_lea.vmem %s382_s23, 768  ;;  %p534_p2 = scmp.lt.s32.totalorder %s382_s23, %s382_s23 }
  0x2e   :  { %299 = vmatpush1.bf16.msra.mxu1 %v458_v37  ;;  %v231_v1 = vrot.slane %v226_v63, %v230_v61  ;;  %v239_v2 = vrot.slane %v226_v63, %v238_v62  ;;  %p530_p1 = scmp.ne.s32.totalorder %s382_s23, %s529_s6  ;;  %p535_p3 = scmp.lt.s32.totalorder %s529_s6, %s529_s6 }
  0x2f   :  { %425 = vmatmul.mubr.msk.bf16.vlgmr.msra.gmra.mxu0 %vm103_vm1, %v451_v3 }
  0x30   :  { %432 = vmatprep.mubr.msk.bf16.mxu0 %vm563_vm0, %v562_v0  ;;  %429 = vmatpush3.bf16.msra.mxu0 %v455_v35  ;;  %p536_p4 = por %p535_p3, %p534_p2 }
  0x31   :  { %430 = vmatprep.subr.bf16.mxu0 %v562_v0  ;;  %v234_v0 = vsub.s32 1, %v229_v60 }
  0x32   :  { %p537_p5 = pnand %p536_p4, %p530_p1 }
  0x33   :  { %v235_v3 = vrot.slane %v226_v63, %v234_v0 }
  0x34   :  { %431 = vmatpush3.bf16.msra.mxu0 %v459_v38 }
  0xef   :  { %v141_v5 = vpop.f32.mrf.mxu0 }
  0xf0   :  { %v142_v6 = vadd.f32 %v394_v4, %v141_v5 }
  0xf1   :  { %v426_v7 = vpop.f32.mrf.mxu0 }
  0xf2   :  { %v150_v8 = vmul.f32 0.70710677, %v142_v6  ;;  %v148_v14 = vmul.f32 0.5, %v142_v6 }
  0xf3   :  { %v144_v9 = vpop.f32.mrf.mxu0 }
  0xf4   :  { %461 = verf.f32 %v150_v8  ;;  %v145_v10 = vadd.f32 %v394_v4, %v144_v9 }
  0xf5   :  { %v427_v11 = vpop.f32.mrf.mxu0 }
  0xf6   :  { %v151_v12 = vmul.f32 0.70710677, %v145_v10  ;;  %v149_v18 = vmul.f32 0.5, %v145_v10 }
  0xf8   :  { %463 = verf.f32 %v151_v12 }
 0x101   :  { %v462_v13 = vpop.eup %461 }
 0x102   :  { %v154_v15 = vadd.f32 1.0, %v462_v13 }
 0x104   :  { %v156_v16 = vmul.f32 %v154_v15, %v148_v14 }
 0x105   :  { %v464_v17 = vpop.eup %463 }
 0x106   :  { %v158_v19 = vsel %vm103_vm1, %v156_v16, 0.0  ;;  %v155_v20 = vadd.f32 1.0, %v464_v17 }
 0x107   :  { %159 = vadd.xlane.f32.xlu0 %v158_v19 }
 0x108   :  { %v157_v21 = vmul.f32 %v155_v20, %v149_v18 }
 0x10a   :  { %v162_v22 = vsel %vm161_vm2, %v157_v21, 0.0 }
 0x10b   :  { %163 = vadd.xlane.f32.xlu0 %v162_v22 }
 0x190   :  { %v160_v23 = vpop.xlane.xlu0 %159 }
 0x191   :  { %v166_v24 = vmul.f32 0.03125, %v160_v23 }
 0x193   :  { %v168_v25 = vsub.f32 %v156_v16, %v166_v24 }
 0x194   :  { %v164_v26 = vpop.xlane.xlu0 %163 }
 0x195   :  { %v167_v27 = vmul.f32 0.03125, %v164_v26  ;;  %v170_v28 = vmul.f32 %v168_v25, %v168_v25 }
 0x197   :  { %v169_v29 = vsub.f32 %v157_v21, %v167_v27  ;;  %v172_v30 = vsel %vm103_vm1, %v170_v28, 0.0 }
 0x198   :  { %173 = vadd.xlane.f32.xlu1 %v172_v30 }
 0x199   :  { %v171_v31 = vmul.f32 %v169_v29, %v169_v29 }
 0x19b   :  { %v175_v32 = vsel %vm161_vm2, %v171_v31, 0.0 }
 0x19c   :  { %176 = vadd.xlane.f32.xlu1 %v175_v32 }
 0x221   :  { %v174_v40 = vpop.xlane.xlu1 %173 }
 0x222   :  { %v178_v41 = vmul.f32 0.03125, %v174_v40 }
 0x224   :  { %v180_v42 = vadd.f32 1e-05, %v178_v41 }
 0x225   :  { %v177_v43 = vpop.xlane.xlu1 %176 }
 0x226   :  { %465 = vrsqrt.f32 %v180_v42  ;;  %v179_v44 = vmul.f32 0.03125, %v177_v43 }
 0x228   :  { %v181_v45 = vadd.f32 1e-05, %v179_v44 }
 0x22a   :  { %467 = vrsqrt.f32 %v181_v45 }
 0x233   :  { %v466_v46 = vpop.eup %465 }
 0x234   :  { %v184_v48 = vmul.f32 %v466_v46, %v168_v25 }
 0x236   :  { %v193_v50 = vmul.f32 %v399_v47, %v184_v48 }
 0x237   :  { %v468_v51 = vpop.eup %467 }
 0x238   :  { %v202_v52 = vadd.f32 %v400_v49, %v193_v50  ;;  %v185_v53 = vmul.f32 %v468_v51, %v169_v29 }
 0x23a   :  { %v412_v54 = vpack.c.bf16 %v202_v52, %v202_v52  ;;  %v194_v55 = vmul.f32 %v399_v47, %v185_v53 }
 0x23c   :  { %213 = vst.msk [vmem:[#allocation2] sm:$0xf] %vm212_vm3, %v412_v54  ;;  %v203_v56 = vadd.f32 %v400_v49, %v194_v55 }
 0x23e   :  { %v413_v57 = vpack.c.bf16 %v203_v56, %v203_v56 }
 0x240   :  { %215 = vst.msk [vmem:[#allocation2 + $0x4] sm:$0x7] %vm214_vm4, %v413_v57 }
 0x247   :  { %v460_v58 = vld [vmem:[#allocation2] sm:$0x7f]  }
 0x248   :  { %410 = vmatmul.mubr.msk.bf16.vlgmr.msra.gmra.mxu1 %vm103_vm1, %v460_v58  ;;  %433 = vmatmul.mubr.msk.bf16.vlgmr.msra.gmra.mxu0 %vm103_vm1, %v460_v58 }
 0x308   :  { %v318_v4 = vpop.f32.mrf.mxu1  ;;  %v361_v5 = vpop.f32.mrf.mxu0 }
 0x309   :  { %v319_v6 = vadd.f32 %v318_v4, %v231_v1  ;;  %v362_v7 = vadd.f32 %v361_v5, %v239_v2 }
 0x30a   :  { %v320_v8 = vpop.f32.mrf.mxu1  ;;  %v434_v9 = vpop.f32.mrf.mxu0 }
 0x30b   :  { %368 = vst [vmem:[#allocation9] sm:$0xff] %v319_v6  ;;  %371 = vst.msk [vmem:[#allocation9 + $0x10] sm:$0xff] %vm370_vm5, %v362_v7  ;;  %v321_v10 = vadd.f32 %v320_v8, %v235_v3 }
 0x30c   :  { %v322_v11 = vpop.f32.mrf.mxu1  ;;  %v364_v12 = vpop.f32.mrf.mxu0 }
 0x30d   :  { %369 = vst [vmem:[#allocation9 + $0x8] sm:$0xff] %v321_v10  ;;  %v323_v13 = vadd.f32 %v322_v11, %v231_v1  ;;  %v365_v14 = vadd.f32 %v364_v12, %v239_v2 }
 0x30e   :  { %v324_v15 = vpop.f32.mrf.mxu1  ;;  %v435_v16 = vpop.f32.mrf.mxu0 }
 0x30f   :  { %372 = vst [vmem:[#allocation9 + $0x18] sm:$0x3f] %v323_v13  ;;  %375 = vst.msk [vmem:[#allocation9 + $0x28] sm:$0x3f] %vm374_vm6, %v365_v14  ;;  %v325_v17 = vadd.f32 %v324_v15, %v235_v3 }
 0x311   :  { %373 = vst [vmem:[#allocation9 + $0x20] sm:$0x3f] %v325_v17 }
 0x312   :  { %540 = shalt.err (!%p537_p5)
}
 0x313   :  { %s566_s24 = smov 384   ;;  %s567_s25 = smov 24  }
 0x314   :  { %387 = dma.vmem_to_hbm [thread:$0]  %s382_s23, 768, %s644_s7, [#allocation5], %s566_s24, %s566_s24, %s567_s25  }
 0x315   :  { %553 = dma.done.wait [#allocation5], 768  }
 0x316   :  { %554 = vsyncadd [#allocation5], 4294966528 }
 0x317   :  { %391 = vsyncpa [#allocation4], 1 }
 0x318   :  { %392 = vsyncpa [#allocation7], 1 }
 0x319   :  { %393 = vsyncpa [#allocation5], 1 }

</bundles_post_ra>
